<compile_context>
chip_gen: v7x
topology: tpu7x:2x2x1
jax: 0.10.0
libtpu: 0.0.40
codegen_flags: <defaults>
</compile_context>

<pallas_src>
import jax
import jax.numpy as jnp
from jax import lax
from jax.experimental import pallas as pl
from jax.experimental.pallas import tpu as pltpu


def unet_innermost_forward(x_nchw, w_down, w_up, gamma, beta):
    """x: [N, input_nc, H, W] -> [N, input_nc + outer_nc, H, W] (f32)."""
    f32, bf16 = jnp.float32, jnp.bfloat16
    n, cin, h, w = x_nchw.shape
    inner_nc = w_down.shape[0]
    outer_nc = w_up.shape[1]
    assert h % 2 == 0 and w % 2 == 0
    ho, wo = h // 2, w // 2

    # ----------------------------- canvas geometry -----------------------------
    cw = wo + 1                          # canvas row width (cols 0..wo hold data)
    zlen = (ho + 1) * cw                 # per-image contiguous s2d block (rows 0..ho)
    img = ((zlen + 127) // 128) * 128    # per-image lane stride (128-aligned)
    L0 = 128                             # zero prefix of the xc canvas (row/col -1 reads)
    assert cw + 1 <= L0                  # see TODO(synk) above for large wo
    w_out = n * img                      # phase-output / o_ref lane width (lane dense)
    w_xc = w_out + 128                   # down-conv output width (covers up-conv reach)
    w_xcs = L0 + w_xc                    # xc canvas width
    w_xs = w_out + L0                    # stacked up-tap width
    w_z = w_xc + 128                     # z canvas width (covers down-conv reach)
    zch = 4 * cin                        # space-to-depth channel count
    norm = 1.0 / float(n * h * w)
    eps = 1e-5

    # ---- prologue: ONE bf16 materialization of the space-to-depth input ----
    # z[n, (py,px,c), a*cw + b] = x_pad[n, c, 2a+py, 2b+px],  a<=ho, b<=wo
    x_pad = jnp.pad(x_nchw.astype(bf16), ((0, 0), (0, 0), (1, 1), (1, 1)))
    z = x_pad.reshape(n, cin, ho + 1, 2, wo + 1, 2)          # [n,c,a,py,b,px]
    z = z.transpose(0, 3, 5, 1, 2, 4).reshape(n, zch, zlen)  # cw == wo + 1

    # ------------------------------- weights ----------------------------------
    # Down conv, stacked-tap form: col = (2u+v)*4*cin + (2py+px)*cin + c
    wd6 = w_down.astype(bf16).reshape(inner_nc, cin, 2, 2, 2, 2)   # [o,c,u,py,v,px]
    wd2 = wd6.transpose(0, 2, 4, 3, 5, 1).reshape(inner_nc, 4 * zch)
    # Transposed conv, phase/stacked-tap form:
    #   wu4[2*qy+qx][o, (2u+v)*inner + c] = w_up[c, o, 3-qy-2u, 3-qx-2v]
    wf = w_up.astype(bf16)[:, :, ::-1, ::-1]
    wu6 = wf.reshape(inner_nc, outer_nc, 2, 2, 2, 2)               # [c,o,u,qy,v,qx]
    wu4 = wu6.transpose(3, 5, 1, 2, 4, 0).reshape(4, outer_nc, 4 * inner_nc)

    # -------------------------------- masks ------------------------------------
    lane = jnp.arange(w_xc)
    rem = lane % img
    m_xc = ((lane // img < n) & (rem // cw < ho) & (rem % cw < wo))
    m_xc = m_xc.astype(f32)[None, :]                               # valid xc cells
    remo = jnp.arange(w_out) % img
    m_bn = ((remo // cw < ho) & (remo % cw < wo)).astype(f32)[None, :]

    g = gamma.astype(f32).reshape(outer_nc, 1)
    b = beta.astype(f32).reshape(outer_nc, 1)

    # -------------------------------- kernel -----------------------------------
    def kernel(z_ref, wd_ref, wu_ref, mxc_ref, mbn_ref, g_ref, b_ref, o_ref,
               z_s, zs4, xc_s, xs4):
        # -- stage A: LeakyReLU + place each image's s2d block on the canvas --
        z_s[...] = jnp.zeros_like(z_s)
        xc_s[...] = jnp.zeros_like(xc_s)
        for i in range(n):
            blk = z_ref[i]                                   # [4*cin, zlen] bf16
            blk = jnp.where(blk > 0, blk, blk * 0.2)         # LeakyReLU(0.2)
            z_s[:, pl.ds(i * img, zlen)] = blk               # 128-aligned store
        # -- stage B: stack the 4 down-conv taps along the contraction axis --
        for u in range(2):
            for v in range(2):
                t = 2 * u + v
                zs4[t * zch:(t + 1) * zch, :] = z_s[:, pl.ds(u * cw + v, w_xc)]
        # -- stage C: whole down conv = ONE bf16 MXU dot + ReLU + mask --
        xc = jnp.dot(wd_ref[...], zs4[...], preferred_element_type=jnp.float32)
        xc = jnp.maximum(xc, 0.0) * mxc_ref[...]             # zero the junk lanes
        xc_s[:, pl.ds(L0, w_xc)] = xc                        # 128-aligned store
        # -- stage D: stack the 4 up-conv taps along the contraction axis --
        for u in range(2):
            for v in range(2):
                t = 2 * u + v
                xs4[t * inner_nc:(t + 1) * inner_nc, :] = \
                    xc_s[:, pl.ds(u * cw + v, w_xs)]
        # -- stage E: 4 sub-pixel phase dots (transposed conv) + BN vector sums --
        mbn = mbn_ref[...]
        vsum = jnp.zeros((outer_nc, w_out), jnp.float32)
        vsq = jnp.zeros((outer_nc, w_out), jnp.float32)
        phases = []
        for qy in range(2):
            for qx in range(2):
                ph = 2 * qy + qx
                base = L0 - cw - 1 + qy * cw + qx            # >= 0 (cw+1 <= L0)
                rhs = xs4[:, pl.ds(base, w_out)].astype(jnp.bfloat16)
                y_ph = jnp.dot(wu_ref[ph], rhs,
                               preferred_element_type=jnp.float32)
                pm = y_ph * mbn                              # mask junk lanes
                vsum = vsum + pm
                vsq = vsq + pm * y_ph
                phases.append(y_ph)
        # -- stage F: BN batch stats (f32) + ONE dense [4*outer_nc, w_out] store --
        mean = jnp.sum(vsum, axis=1, keepdims=True) * norm
        var = jnp.sum(vsq, axis=1, keepdims=True) * norm - mean * mean
        scale = g_ref[...] * lax.rsqrt(var + eps)
        shift = b_ref[...] - mean * scale
        o_ref[...] = jnp.concatenate(
            [phases[p] * scale + shift for p in range(4)], axis=0)

    # Rough in-kernel VMEM need (bytes); production tiling should re-derive this
    # per generation (v7x: 64 MiB VMEM, v5e/v6e: 128 MiB).
    vmem_bytes = (2 * (z.size + wd2.size + wu4.size + zch * w_z + 4 * zch * w_xc)
                  + 4 * (m_xc.size + m_bn.size + g.size + b.size
                         + inner_nc * w_xcs + 4 * inner_nc * w_xs
                         + 4 * outer_nc * w_out))

    out_ph = pl.pallas_call(
        kernel,
        out_shape=jax.ShapeDtypeStruct((4 * outer_nc, w_out), f32),
        in_specs=[pl.BlockSpec(memory_space=pltpu.MemorySpace.VMEM)] * 7,
        out_specs=pl.BlockSpec(memory_space=pltpu.MemorySpace.VMEM),
        scratch_shapes=[
            pltpu.VMEM((zch, w_z), bf16),            # z_s  : LeakyReLU'd s2d canvas
            pltpu.VMEM((4 * zch, w_xc), bf16),       # zs4  : stacked down-conv taps
            pltpu.VMEM((inner_nc, w_xcs), f32),      # xc_s : masked ReLU(xc) canvas
            pltpu.VMEM((4 * inner_nc, w_xs), f32),   # xs4  : stacked up-conv taps
        ],
        compiler_params=pltpu.CompilerParams(
            vmem_limit_bytes=int(max(16 << 20, 2 * vmem_bytes))),
    )(z, wd2, wu4, m_xc, m_bn, g, b)

    # ------ epilogue: pixel-shuffle the 4 phases back to NCHW and skip-concat ---
    y = out_ph.reshape(2, 2, outer_nc, n, img)[:, :, :, :, :ho * cw]
    y = y.reshape(2, 2, outer_nc, n, ho, cw)[..., :wo]       # [qy,qx,o,n,a,b]
    y = y.transpose(3, 2, 4, 0, 5, 1).reshape(n, outer_nc, h, w)
    return jnp.concatenate([x_nchw.astype(f32), y], axis=1)


# ------------------------- pure-JAX f32 reference -----------------------------

def _reference_forward(x, w_down, w_up, gamma, beta):
    eps = 1e-5
    xl = jnp.where(x > 0, x, 0.2 * x)
    dn = lax.conv_general_dilated(
        xl, w_down, window_strides=(2, 2), padding=((1, 1), (1, 1)),
        dimension_numbers=("NCHW", "OIHW", "NCHW"),
        precision=lax.Precision.HIGHEST)
    xc = jnp.maximum(dn, 0.0)
    w_t = jnp.transpose(w_up, (1, 0, 2, 3))[:, :, ::-1, ::-1]
    y = lax.conv_general_dilated(
        xc, w_t, window_strides=(1, 1), padding=((2, 2), (2, 2)),
        lhs_dilation=(2, 2), dimension_numbers=("NCHW", "OIHW", "NCHW"),
        precision=lax.Precision.HIGHEST)
    mean = y.mean(axis=(0, 2, 3), keepdims=True)
    var = y.var(axis=(0, 2, 3), keepdims=True)
    yn = (y - mean) * lax.rsqrt(var + eps)
    yn = yn * gamma[None, :, None, None] + beta[None, :, None, None]
    return jnp.concatenate([x, yn], axis=1)


# ----------------------------------- main --------------------------------------

if __name__ == "__main__":
    # Small shapes: batch=2, outer_nc=input_nc=4, inner_nc=8, spatial=16.
    N, OUTER_NC, INNER_NC, H, W = 2, 4, 8, 16, 16
    INPUT_NC = OUTER_NC  # input_nc defaults to outer_nc

    key = jax.random.PRNGKey(0)
    kx, kwd, kwu, kg, kb = jax.random.split(key, 5)

    x = jax.random.normal(kx, (N, INPUT_NC, H, W), jnp.float32)
    # Conv2d weight: [out=inner_nc, in=input_nc, 4, 4]          (bias=False)
    w_down = 0.1 * jax.random.normal(kwd, (INNER_NC, INPUT_NC, 4, 4), jnp.float32)
    # ConvTranspose2d weight: [in=inner_nc, out=outer_nc, 4, 4] (bias=False)
    w_up = 0.1 * jax.random.normal(kwu, (INNER_NC, OUTER_NC, 4, 4), jnp.float32)
    # BatchNorm2d(outer_nc) affine params
    gamma = 1.0 + 0.1 * jax.random.normal(kg, (OUTER_NC,), jnp.float32)
    beta = 0.1 * jax.random.normal(kb, (OUTER_NC,), jnp.float32)

    out = jax.jit(unet_innermost_forward)(x, w_down, w_up, gamma, beta)
    jax.block_until_ready(out)

    assert out.shape == (N, INPUT_NC + OUTER_NC, H, W), out.shape
    assert bool(jnp.isfinite(out).all())

    # bf16 MXU operands (f32 accumulate / f32 BN stats) -> loose tolerance.
    ref = _reference_forward(x, w_down, w_up, gamma, beta)
    assert bool(jnp.allclose(out, ref, rtol=0.1, atol=0.1)), \
        float(jnp.max(jnp.abs(out - ref)))

    print("KERNEL_OK")
</pallas_src>

<mosaic_0001>
module attributes {stable_mosaic.version = 11 : i64} {
  func.func @kernel(%arg0: memref<2x16x81xbf16, #tpu.memory_space<vmem>>, %arg1: memref<8x64xbf16, #tpu.memory_space<vmem>>, %arg2: memref<4x4x32xbf16, #tpu.memory_space<vmem>>, %arg3: memref<1x384xf32, #tpu.memory_space<vmem>>, %arg4: memref<1x256xf32, #tpu.memory_space<vmem>>, %arg5: memref<4x1xf32, #tpu.memory_space<vmem>>, %arg6: memref<4x1xf32, #tpu.memory_space<vmem>>, %arg7: memref<16x256xf32, #tpu.memory_space<vmem>>, %arg8: memref<16x512xbf16, #tpu.memory_space<vmem>>, %arg9: memref<64x384xbf16, #tpu.memory_space<vmem>>, %arg10: memref<8x512xf32, #tpu.memory_space<vmem>>, %arg11: memref<32x384xf32, #tpu.memory_space<vmem>>) attributes {dimension_semantics = [], scalar_prefetch = 0 : i64, scratch_operands = 4 : i64, tpu.core_type = #tpu.core_type<tc>} {
    %cst = arith.constant 0.000000e+00 : bf16
    %0 = vector.broadcast %cst : bf16 to vector<16x512xbf16>
    %c0 = arith.constant 0 : index
    %c0_0 = arith.constant 0 : index
    %1 = vector.load %arg8[%c0, %c0_0] : memref<16x512xbf16, #tpu.memory_space<vmem>>, vector<16x512xbf16>
    tpu.vector_store %arg8[%c0, %c0_0], %0 {strides = array<i32>} : memref<16x512xbf16, #tpu.memory_space<vmem>>, vector<16x512xbf16>,
    %cst_1 = arith.constant 0.000000e+00 : f32
    %2 = vector.broadcast %cst_1 : f32 to vector<8x512xf32>
    %c0_2 = arith.constant 0 : index
    %c0_3 = arith.constant 0 : index
    %3 = vector.load %arg10[%c0_2, %c0_3] : memref<8x512xf32, #tpu.memory_space<vmem>>, vector<8x512xf32>
    tpu.vector_store %arg10[%c0_2, %c0_3], %2 {strides = array<i32>} : memref<8x512xf32, #tpu.memory_space<vmem>>, vector<8x512xf32>,
    %c0_4 = arith.constant 0 : index
    %c0_5 = arith.constant 0 : index
    %c0_6 = arith.constant 0 : index
    %4 = vector.load %arg0[%c0_4, %c0_5, %c0_6] : memref<2x16x81xbf16, #tpu.memory_space<vmem>>, vector<1x16x81xbf16>
    %5 = vector.shape_cast %4 : vector<1x16x81xbf16> to vector<16x81xbf16>
    %cst_7 = arith.constant 0.000000e+00 : bf16
    %6 = vector.broadcast %cst_7 : bf16 to vector<16x81xbf16>
    %7 = arith.cmpf ogt, %5, %6 : vector<16x81xbf16>
    %cst_8 = arith.constant 2.001950e-01 : bf16
    %8 = vector.broadcast %cst_8 : bf16 to vector<16x81xbf16>
    %9 = arith.mulf %5, %8 : vector<16x81xbf16>
    %10 = arith.select %7, %5, %9 : vector<16x81xi1>, vector<16x81xbf16>
    %c0_9 = arith.constant 0 : index
    %c0_10 = arith.constant 0 : index
    %11 = vector.load %arg8[%c0_9, %c0_10] : memref<16x512xbf16, #tpu.memory_space<vmem>>, vector<16x81xbf16>
    tpu.vector_store %arg8[%c0_9, %c0_10], %10 {strides = array<i32>} : memref<16x512xbf16, #tpu.memory_space<vmem>>, vector<16x81xbf16>,
    %c1 = arith.constant 1 : index
    %c0_11 = arith.constant 0 : index
    %c0_12 = arith.constant 0 : index
    %12 = vector.load %arg0[%c1, %c0_11, %c0_12] : memref<2x16x81xbf16, #tpu.memory_space<vmem>>, vector<1x16x81xbf16>
    %13 = vector.shape_cast %12 : vector<1x16x81xbf16> to vector<16x81xbf16>
    %cst_13 = arith.constant 0.000000e+00 : bf16
    %14 = vector.broadcast %cst_13 : bf16 to vector<16x81xbf16>
    %15 = arith.cmpf ogt, %13, %14 : vector<16x81xbf16>
    %cst_14 = arith.constant 2.001950e-01 : bf16
    %16 = vector.broadcast %cst_14 : bf16 to vector<16x81xbf16>
    %17 = arith.mulf %13, %16 : vector<16x81xbf16>
    %18 = arith.select %15, %13, %17 : vector<16x81xi1>, vector<16x81xbf16>
    %c0_15 = arith.constant 0 : index
    %c128 = arith.constant 128 : index
    %19 = vector.load %arg8[%c0_15, %c128] : memref<16x512xbf16, #tpu.memory_space<vmem>>, vector<16x81xbf16>
    tpu.vector_store %arg8[%c0_15, %c128], %18 {strides = array<i32>} : memref<16x512xbf16, #tpu.memory_space<vmem>>, vector<16x81xbf16>,
    %c0_16 = arith.constant 0 : index
    %c0_17 = arith.constant 0 : index
    %20 = vector.load %arg8[%c0_16, %c0_17] : memref<16x512xbf16, #tpu.memory_space<vmem>>, vector<16x384xbf16>
    %c0_18 = arith.constant 0 : index
    %c0_19 = arith.constant 0 : index
    %21 = vector.load %arg9[%c0_18, %c0_19] : memref<64x384xbf16, #tpu.memory_space<vmem>>, vector<16x384xbf16>
    tpu.vector_store %arg9[%c0_18, %c0_19], %20 {strides = array<i32>} : memref<64x384xbf16, #tpu.memory_space<vmem>>, vector<16x384xbf16>,
    %c0_20 = arith.constant 0 : index
    %c1_21 = arith.constant 1 : index
    %22 = vector.load %arg8[%c0_20, %c1_21] : memref<16x512xbf16, #tpu.memory_space<vmem>>, vector<16x384xbf16>
    %c16 = arith.constant 16 : index
    %c0_22 = arith.constant 0 : index
    %23 = vector.load %arg9[%c16, %c0_22] : memref<64x384xbf16, #tpu.memory_space<vmem>>, vector<16x384xbf16>
    tpu.vector_store %arg9[%c16, %c0_22], %22 {strides = array<i32>} : memref<64x384xbf16, #tpu.memory_space<vmem>>, vector<16x384xbf16>,
    %c0_23 = arith.constant 0 : index
    %c9 = arith.constant 9 : index
    %24 = vector.load %arg8[%c0_23, %c9] : memref<16x512xbf16, #tpu.memory_space<vmem>>, vector<16x384xbf16>
    %c32 = arith.constant 32 : index
    %c0_24 = arith.constant 0 : index
    %25 = vector.load %arg9[%c32, %c0_24] : memref<64x384xbf16, #tpu.memory_space<vmem>>, vector<16x384xbf16>
    tpu.vector_store %arg9[%c32, %c0_24], %24 {strides = array<i32>} : memref<64x384xbf16, #tpu.memory_space<vmem>>, vector<16x384xbf16>,
    %c0_25 = arith.constant 0 : index
    %c10 = arith.constant 10 : index
    %26 = vector.load %arg8[%c0_25, %c10] : memref<16x512xbf16, #tpu.memory_space<vmem>>, vector<16x384xbf16>
    %c48 = arith.constant 48 : index
    %c0_26 = arith.constant 0 : index
    %27 = vector.load %arg9[%c48, %c0_26] : memref<64x384xbf16, #tpu.memory_space<vmem>>, vector<16x384xbf16>
    tpu.vector_store %arg9[%c48, %c0_26], %26 {strides = array<i32>} : memref<64x384xbf16, #tpu.memory_space<vmem>>, vector<16x384xbf16>,
    %c0_27 = arith.constant 0 : index
    %c0_28 = arith.constant 0 : index
    %28 = vector.load %arg1[%c0_27, %c0_28] : memref<8x64xbf16, #tpu.memory_space<vmem>>, vector<8x64xbf16>
    %c0_29 = arith.constant 0 : index
    %c0_30 = arith.constant 0 : index
    %29 = vector.load %arg9[%c0_29, %c0_30] : memref<64x384xbf16, #tpu.memory_space<vmem>>, vector<64x384xbf16>
    %cst_31 = arith.constant dense<0.000000e+00> : vector<8x384xf32>
    %30 = tpu.matmul %28, %29, %cst_31 {dimension_numbers = #tpu.dot_dimension_numbers<[1], [0], [0], [1], [0, 0, 1, 1], [], []>} : vector<8x64xbf16>, vector<64x384xbf16>, vector<8x384xf32> -> vector<8x384xf32>
    %cst_32 = arith.constant 0.000000e+00 : f32
    %31 = vector.broadcast %cst_32 : f32 to vector<8x384xf32>
    %32 = arith.maximumf %30, %31 : vector<8x384xf32>
    %c0_33 = arith.constant 0 : index
    %c0_34 = arith.constant 0 : index
    %33 = vector.load %arg3[%c0_33, %c0_34] : memref<1x384xf32, #tpu.memory_space<vmem>>, vector<1x384xf32>
    %34 = vector.broadcast %33 : vector<1x384xf32> to vector<8x384xf32>
    %35 = arith.mulf %32, %34 : vector<8x384xf32>
    %c0_35 = arith.constant 0 : index
    %c128_36 = arith.constant 128 : index
    %36 = vector.load %arg10[%c0_35, %c128_36] : memref<8x512xf32, #tpu.memory_space<vmem>>, vector<8x384xf32>
    tpu.vector_store %arg10[%c0_35, %c128_36], %35 {strides = array<i32>} : memref<8x512xf32, #tpu.memory_space<vmem>>, vector<8x384xf32>,
    %c0_37 = arith.constant 0 : index
    %c0_38 = arith.constant 0 : index
    %37 = vector.load %arg10[%c0_37, %c0_38] : memref<8x512xf32, #tpu.memory_space<vmem>>, vector<8x384xf32>
    %c0_39 = arith.constant 0 : index
    %c0_40 = arith.constant 0 : index
    %38 = vector.load %arg11[%c0_39, %c0_40] : memref<32x384xf32, #tpu.memory_space<vmem>>, vector<8x384xf32>
    tpu.vector_store %arg11[%c0_39, %c0_40], %37 {strides = array<i32>} : memref<32x384xf32, #tpu.memory_space<vmem>>, vector<8x384xf32>,
    %c0_41 = arith.constant 0 : index
    %c1_42 = arith.constant 1 : index
    %39 = vector.load %arg10[%c0_41, %c1_42] : memref<8x512xf32, #tpu.memory_space<vmem>>, vector<8x384xf32>
    %c8 = arith.constant 8 : index
    %c0_43 = arith.constant 0 : index
    %40 = vector.load %arg11[%c8, %c0_43] : memref<32x384xf32, #tpu.memory_space<vmem>>, vector<8x384xf32>
    tpu.vector_store %arg11[%c8, %c0_43], %39 {strides = array<i32>} : memref<32x384xf32, #tpu.memory_space<vmem>>, vector<8x384xf32>,
    %c0_44 = arith.constant 0 : index
    %c9_45 = arith.constant 9 : index
    %41 = vector.load %arg10[%c0_44, %c9_45] : memref<8x512xf32, #tpu.memory_space<vmem>>, vector<8x384xf32>
    %c16_46 = arith.constant 16 : index
    %c0_47 = arith.constant 0 : index
    %42 = vector.load %arg11[%c16_46, %c0_47] : memref<32x384xf32, #tpu.memory_space<vmem>>, vector<8x384xf32>
    tpu.vector_store %arg11[%c16_46, %c0_47], %41 {strides = array<i32>} : memref<32x384xf32, #tpu.memory_space<vmem>>, vector<8x384xf32>,
    %c0_48 = arith.constant 0 : index
    %c10_49 = arith.constant 10 : index
    %43 = vector.load %arg10[%c0_48, %c10_49] : memref<8x512xf32, #tpu.memory_space<vmem>>, vector<8x384xf32>
    %c24 = arith.constant 24 : index
    %c0_50 = arith.constant 0 : index
    %44 = vector.load %arg11[%c24, %c0_50] : memref<32x384xf32, #tpu.memory_space<vmem>>, vector<8x384xf32>
    tpu.vector_store %arg11[%c24, %c0_50], %43 {strides = array<i32>} : memref<32x384xf32, #tpu.memory_space<vmem>>, vector<8x384xf32>,
    %c0_51 = arith.constant 0 : index
    %c0_52 = arith.constant 0 : index
    %45 = vector.load %arg4[%c0_51, %c0_52] : memref<1x256xf32, #tpu.memory_space<vmem>>, vector<1x256xf32>
    %cst_53 = arith.constant 0.000000e+00 : f32
    %46 = vector.broadcast %cst_53 : f32 to vector<4x256xf32>
    %cst_54 = arith.constant 0.000000e+00 : f32
    %47 = vector.broadcast %cst_54 : f32 to vector<4x256xf32>
    %c0_55 = arith.constant 0 : index
    %c118 = arith.constant 118 : index
    %48 = vector.load %arg11[%c0_55, %c118] : memref<32x384xf32, #tpu.memory_space<vmem>>, vector<32x256xf32>
    %49 = arith.truncf %48 : vector<32x256xf32> to vector<32x256xbf16>
    %c0_56 = arith.constant 0 : index
    %c0_57 = arith.constant 0 : index
    %c0_58 = arith.constant 0 : index
    %50 = vector.load %arg2[%c0_56, %c0_57, %c0_58] : memref<4x4x32xbf16, #tpu.memory_space<vmem>>, vector<1x4x32xbf16>
    %51 = vector.shape_cast %50 : vector<1x4x32xbf16> to vector<4x32xbf16>
    %cst_59 = arith.constant dense<0.000000e+00> : vector<4x256xf32>
    %52 = tpu.matmul %51, %49, %cst_59 {dimension_numbers = #tpu.dot_dimension_numbers<[1], [0], [0], [1], [0, 0, 1, 1], [], []>} : vector<4x32xbf16>, vector<32x256xbf16>, vector<4x256xf32> -> vector<4x256xf32>
    %53 = vector.broadcast %45 : vector<1x256xf32> to vector<4x256xf32>
    %54 = arith.mulf %52, %53 : vector<4x256xf32>
    %55 = arith.addf %46, %54 : vector<4x256xf32>
    %56 = arith.mulf %54, %52 : vector<4x256xf32>
    %57 = arith.addf %47, %56 : vector<4x256xf32>
    %c0_60 = arith.constant 0 : index
    %c119 = arith.constant 119 : index
    %58 = vector.load %arg11[%c0_60, %c119] : memref<32x384xf32, #tpu.memory_space<vmem>>, vector<32x256xf32>
    %59 = arith.truncf %58 : vector<32x256xf32> to vector<32x256xbf16>
    %c1_61 = arith.constant 1 : index
    %c0_62 = arith.constant 0 : index
    %c0_63 = arith.constant 0 : index
    %60 = vector.load %arg2[%c1_61, %c0_62, %c0_63] : memref<4x4x32xbf16, #tpu.memory_space<vmem>>, vector<1x4x32xbf16>
    %61 = vector.shape_cast %60 : vector<1x4x32xbf16> to vector<4x32xbf16>
    %cst_64 = arith.constant dense<0.000000e+00> : vector<4x256xf32>
    %62 = tpu.matmul %61, %59, %cst_64 {dimension_numbers = #tpu.dot_dimension_numbers<[1], [0], [0], [1], [0, 0, 1, 1], [], []>} : vector<4x32xbf16>, vector<32x256xbf16>, vector<4x256xf32> -> vector<4x256xf32>
    %63 = vector.broadcast %45 : vector<1x256xf32> to vector<4x256xf32>
    %64 = arith.mulf %62, %63 : vector<4x256xf32>
    %65 = arith.addf %55, %64 : vector<4x256xf32>
    %66 = arith.mulf %64, %62 : vector<4x256xf32>
    %67 = arith.addf %57, %66 : vector<4x256xf32>
    %c0_65 = arith.constant 0 : index
    %c127 = arith.constant 127 : index
    %68 = vector.load %arg11[%c0_65, %c127] : memref<32x384xf32, #tpu.memory_space<vmem>>, vector<32x256xf32>
    %69 = arith.truncf %68 : vector<32x256xf32> to vector<32x256xbf16>
    %c2 = arith.constant 2 : index
    %c0_66 = arith.constant 0 : index
    %c0_67 = arith.constant 0 : index
    %70 = vector.load %arg2[%c2, %c0_66, %c0_67] : memref<4x4x32xbf16, #tpu.memory_space<vmem>>, vector<1x4x32xbf16>
    %71 = vector.shape_cast %70 : vector<1x4x32xbf16> to vector<4x32xbf16>
    %cst_68 = arith.constant dense<0.000000e+00> : vector<4x256xf32>
    %72 = tpu.matmul %71, %69, %cst_68 {dimension_numbers = #tpu.dot_dimension_numbers<[1], [0], [0], [1], [0, 0, 1, 1], [], []>} : vector<4x32xbf16>, vector<32x256xbf16>, vector<4x256xf32> -> vector<4x256xf32>
    %73 = vector.broadcast %45 : vector<1x256xf32> to vector<4x256xf32>
    %74 = arith.mulf %72, %73 : vector<4x256xf32>
    %75 = arith.addf %65, %74 : vector<4x256xf32>
    %76 = arith.mulf %74, %72 : vector<4x256xf32>
    %77 = arith.addf %67, %76 : vector<4x256xf32>
    %c0_69 = arith.constant 0 : index
    %c128_70 = arith.constant 128 : index
    %78 = vector.load %arg11[%c0_69, %c128_70] : memref<32x384xf32, #tpu.memory_space<vmem>>, vector<32x256xf32>
    %79 = arith.truncf %78 : vector<32x256xf32> to vector<32x256xbf16>
    %c3 = arith.constant 3 : index
    %c0_71 = arith.constant 0 : index
    %c0_72 = arith.constant 0 : index
    %80 = vector.load %arg2[%c3, %c0_71, %c0_72] : memref<4x4x32xbf16, #tpu.memory_space<vmem>>, vector<1x4x32xbf16>
    %81 = vector.shape_cast %80 : vector<1x4x32xbf16> to vector<4x32xbf16>
    %cst_73 = arith.constant dense<0.000000e+00> : vector<4x256xf32>
    %82 = tpu.matmul %81, %79, %cst_73 {dimension_numbers = #tpu.dot_dimension_numbers<[1], [0], [0], [1], [0, 0, 1, 1], [], []>} : vector<4x32xbf16>, vector<32x256xbf16>, vector<4x256xf32> -> vector<4x256xf32>
    %83 = vector.broadcast %45 : vector<1x256xf32> to vector<4x256xf32>
    %84 = arith.mulf %82, %83 : vector<4x256xf32>
    %85 = arith.addf %75, %84 : vector<4x256xf32>
    %86 = arith.mulf %84, %82 : vector<4x256xf32>
    %87 = arith.addf %77, %86 : vector<4x256xf32>
    %cst_74 = arith.constant dense<0.000000e+00> : vector<4xf32>
    %88 = vector.multi_reduction <add>, %85, %cst_74 [1] : vector<4x256xf32> to vector<4xf32>
    %89 = vector.shape_cast %88 : vector<4xf32> to vector<4x1xf32>
    %cst_75 = arith.constant 0.001953125 : f32
    %90 = vector.broadcast %cst_75 : f32 to vector<4x1xf32>
    %91 = arith.mulf %89, %90 : vector<4x1xf32>
    %cst_76 = arith.constant dense<0.000000e+00> : vector<4xf32>
    %92 = vector.multi_reduction <add>, %87, %cst_76 [1] : vector<4x256xf32> to vector<4xf32>
    %93 = vector.shape_cast %92 : vector<4xf32> to vector<4x1xf32>
    %cst_77 = arith.constant 0.001953125 : f32
    %94 = vector.broadcast %cst_77 : f32 to vector<4x1xf32>
    %95 = arith.mulf %93, %94 : vector<4x1xf32>
    %96 = arith.mulf %91, %91 : vector<4x1xf32>
    %97 = arith.subf %95, %96 : vector<4x1xf32>
    %c0_78 = arith.constant 0 : index
    %c0_79 = arith.constant 0 : index
    %98 = vector.load %arg5[%c0_78, %c0_79] : memref<4x1xf32, #tpu.memory_space<vmem>>, vector<4x1xf32>
    %cst_80 = arith.constant 9.99999974E-6 : f32
    %99 = vector.broadcast %cst_80 : f32 to vector<4x1xf32>
    %100 = arith.addf %97, %99 : vector<4x1xf32>
    %101 = math.rsqrt %100 : vector<4x1xf32>
    %102 = arith.mulf %98, %101 : vector<4x1xf32>
    %c0_81 = arith.constant 0 : index
    %c0_82 = arith.constant 0 : index
    %103 = vector.load %arg6[%c0_81, %c0_82] : memref<4x1xf32, #tpu.memory_space<vmem>>, vector<4x1xf32>
    %104 = arith.mulf %91, %102 : vector<4x1xf32>
    %105 = arith.subf %103, %104 : vector<4x1xf32>
    %106 = vector.broadcast %102 : vector<4x1xf32> to vector<4x256xf32>
    %107 = arith.mulf %52, %106 : vector<4x256xf32>
    %108 = vector.broadcast %105 : vector<4x1xf32> to vector<4x256xf32>
    %109 = arith.addf %107, %108 : vector<4x256xf32>
    %110 = vector.broadcast %102 : vector<4x1xf32> to vector<4x256xf32>
    %111 = arith.mulf %62, %110 : vector<4x256xf32>
    %112 = vector.broadcast %105 : vector<4x1xf32> to vector<4x256xf32>
    %113 = arith.addf %111, %112 : vector<4x256xf32>
    %114 = vector.broadcast %102 : vector<4x1xf32> to vector<4x256xf32>
    %115 = arith.mulf %72, %114 : vector<4x256xf32>
    %116 = vector.broadcast %105 : vector<4x1xf32> to vector<4x256xf32>
    %117 = arith.addf %115, %116 : vector<4x256xf32>
    %118 = vector.broadcast %102 : vector<4x1xf32> to vector<4x256xf32>
    %119 = arith.mulf %82, %118 : vector<4x256xf32>
    %120 = vector.broadcast %105 : vector<4x1xf32> to vector<4x256xf32>
    %121 = arith.addf %119, %120 : vector<4x256xf32>
    %122 = tpu.concatenate %109, %113, %117, %121 in 0 : vector<4x256xf32>, vector<4x256xf32>, vector<4x256xf32>, vector<4x256xf32> -> vector<16x256xf32>
    %c0_83 = arith.constant 0 : index
    %c0_84 = arith.constant 0 : index
    %123 = vector.load %arg7[%c0_83, %c0_84] : memref<16x256xf32, #tpu.memory_space<vmem>>, vector<16x256xf32>
    tpu.vector_store %arg7[%c0_83, %c0_84], %122 {strides = array<i32>} : memref<16x256xf32, #tpu.memory_space<vmem>>, vector<16x256xf32>,
    return
  }
}

</mosaic_0001>

<bundles_post_ra>
// kernel: unet_innermost_forward.1
= control target key start
LH: loop header
LB: loop body
LE: loop exit
PB: predicated region body
PF: predicated region fallthrough
CT: control target
= control target key end

     0   :  { %v830_v0 = vmov 0   ;;  %v831_v4 = vmov 0.0   ;;  %s832_s30 = smov 127   ;;  %vm50_vm2 = vcmask 662528   ;;  %vm834_vm5 = vmmov 0   ;;  %s835_s10 = smov 118   ;;  %s1072_s0 = inlined_call_operand.vmem [shape: bf16[2,16,81], index: 0, kind: input, shape index: {}]   ;;  %s1073_s1 = inlined_call_operand.vmem [shape: bf16[8,64], index: 1, kind: input, shape index: {}]   ;;  %s1074_s3 = inlined_call_operand.vmem [shape: f32[1,384], index: 3, kind: input, shape index: {}]   ;;  %s1075_s2 = inlined_call_operand.vmem [shape: bf16[4,4,32], index: 2, kind: input, shape index: {}]   ;;  %s1076_s4 = inlined_call_operand.vmem [shape: f32[1,256], index: 4, kind: input, shape index: {}]   ;;  %s1077_s5 = inlined_call_operand.vmem [shape: f32[4,1], index: 5, kind: input, shape index: {}]   ;;  %s1078_s6 = inlined_call_operand.vmem [shape: f32[4,1], index: 6, kind: input, shape index: {}]   ;;  %s1079_s7 = inlined_call_operand.vmem [shape: f32[16,256], index: 7, kind: output, shape index: {}]  }
   0x1   :  { %28 = vst [vmem:[#allocation2] sm:$0xff] %v830_v0  ;;  %29 = vst [vmem:[#allocation2 + $0x8] sm:$0xff] %v830_v0  ;;  %v748_v1 = vld [vmem:[%s1072_s0 + $0x8] sm:$0xf]  ;;  %v749_v2 = vld [vmem:[%s1072_s0 + $0xc] sm:$0xf]  ;;  %765 = vmatprep.subr.bf16.mxu1 %v831_v4  ;;  %201 = vmatprep.mubr.bf16.mxu0 %v830_v0  ;;  %v255_v42 = vlaneseq }
   0x2   :  { %v36_v3 = vld [vmem:[%s1072_s0] sm:$0xf]  ;;  %vm55_vm0 = vcmp.gt.bf16.partialorder %v748_v1, 0  ;;  %vm56_vm1 = vcmp.gt.bf16.partialorder %v749_v2, 0  ;;  %v57_v5 = vmul.bf16 1045249613, %v748_v1  ;;  %766 = vmatpush3.bf16.msra.mxu1 %v830_v0  ;;  %826 = vset.pattern.permute.xlu0 %v830_v0 }
   0x3   :  { %v58_v6 = vmul.bf16 1045249613, %v749_v2  ;;  %787 = vrot.lane.b32.xlu0 %v830_v0, %s832_s30  ;;  %v37_v7 = vld [vmem:[%s1072_s0 + $0x4] sm:$0xf]  ;;  %vm38_vm3 = vcmp.gt.bf16.partialorder %v36_v3, 0  ;;  %767 = vmatprep.subr.bf16.mxu1 %v831_v4  ;;  %s833_s0 = smov 119  }
   0x4   :  { %v40_v8 = vmul.bf16 1045249613, %v36_v3  ;;  %v59_v9 = vsel %vm55_vm0, %v748_v1, %v57_v5  ;;  %vm39_vm4 = vcmp.gt.bf16.partialorder %v37_v7, 0  ;;  %v41_v11 = vmul.bf16 1045249613, %v37_v7  ;;  %827 = vset.pattern.permute.xlu1 %v830_v0  ;;  %773 = vmatprep.mubr.msk.bf16.mxu1 %vm834_vm5, %v831_v4  ;;  %s838_s15 = smov 1  }
   0x5   :  { %v60_v10 = vsel %vm56_vm1, %v749_v2, %v58_v6  ;;  %vm90_vm6 = vcmask 1039360   ;;  %vm116_vm7 = vcmask 973824   ;;  %vm142_vm8 = vcmask 965632   ;;  %v152_v39 = vld [vmem:[%s1073_s1] sm:$0xf]  ;;  %s836_s1 = smov 9  }
   0x6   :  { %v750_v12 = vcombine.low %v59_v9, %v60_v10  ;;  %v42_v13 = vsel %vm38_vm3, %v36_v3, %v40_v8  ;;  %v43_v14 = vsel %vm39_vm4, %v37_v7, %v41_v11  ;;  %vm165_vm9 = vcmask 523264   ;;  %v253_v45 = vld [vmem:[%s1074_s3] sm:$0x7]  ;;  %s837_s3 = smov 10  }
   0x7   :  { %v747_v15 = vcombine.low %v42_v13, %v43_v14  ;;  %v930_v43 = vshrl.u32 %v255_v42, 7  ;;  %vm398_vm10 = vcmask 80896   ;;  %vm485_vm11 = vcmask 72704  }
   0x8   :  { %67 = vst.msk [vmem:[#allocation2 + $0x8] sm:$0xff] %vm50_vm2, %v750_v12  ;;  %vm407_vm12 = vcmask 261120   ;;  %vm560_vm13 = vcmask 7168   ;;  %vm675_vm14 = vcmask 1043456  }
   0x9   :  { %51 = vst.msk [vmem:[#allocation2] sm:$0xff] %vm50_vm2, %v747_v15  ;;  %v257_v44 = vsub.s32 0, %v930_v43  ;;  %v261_v46 = vsub.s32 1, %v930_v43  ;;  %v265_v47 = vsub.s32 2, %v930_v43 }
   0xb   :  { %v258_v48 = vrot.slane %v253_v45, %v257_v44  ;;  %v262_v50 = vrot.slane %v253_v45, %v261_v46  ;;  %v266_v55 = vrot.slane %v253_v45, %v265_v47 }
   0xf   :  { %v75_v16 = vld [vmem:[#allocation2 + $0x8] sm:$0xff] }
  0x10   :  { %84 = vrot.lane.b32.xlu0 %v75_v16, %s832_s30  ;;  %169 = vmatprep.subr.bf16.mxu0 %v75_v16  ;;  %v74_v17 = vld [vmem:[#allocation2] sm:$0xff] }
  0x11   :  { %82 = vrot.lane.b32.xlu1 %v74_v17, %s832_s30  ;;  %170 = vmatpush1.bf16.msra.mxu0 %v74_v17 }
  0x14   :  { %792 = vrot.lane.b32.xlu0 %v830_v0, %s833_s0 }
  0x15   :  { %110 = vrot.lane.b32.xlu1 %v75_v16, %s833_s0 }
  0x18   :  { %136 = vrot.lane.b32.xlu0 %v75_v16, %s835_s10 }
  0x19   :  { %108 = vrot.lane.b32.xlu1 %v74_v17, %s833_s0 }
  0x1c   :  { %134 = vrot.lane.b32.xlu0 %v74_v17, %s835_s10 }
  0x1d   :  { %138 = vrot.lane.b32.xlu1 %v830_v0, %s835_s10 }
  0x21   :  { %140 = vrot.lane.b32.xlu1 %v830_v0, %s835_s10 }
  0x75   :  { %v788_v18 = vpop.permute.xlu0 %787 }
  0x76   :  { %v790_v19 = vunpack.i.h.bf16 %v788_v18  ;;  %v789_v20 = vunpack.i.l.bf16 %v788_v18 }
  0x78   :  { %v93_v21 = vsel %vm90_vm6, %v789_v20, %v790_v19 }
  0x79   :  { %768 = vmatpush3.bf16.msra.mxu1 %v93_v21 }
  0x7a   :  { %769 = vmatprep.subr.bf16.mxu1 %v831_v4 }
  0x82   :  { %v85_v22 = vpop.permute.xlu0 %84 }
  0x83   :  { %v92_v23 = vsel %vm90_vm6, %v85_v22, %v789_v20  ;;  %v83_v24 = vpop.permute.xlu1 %82 }
  0x84   :  { %171 = vmatprep.subr.bf16.mxu0 %v92_v23  ;;  %v91_v25 = vsel %vm90_vm6, %v83_v24, %v85_v22 }
  0x85   :  { %172 = vmatpush1.bf16.msra.mxu0 %v91_v25 }
  0x86   :  { %v793_v26 = vpop.permute.xlu0 %792 }
  0x87   :  { %v795_v27 = vunpack.i.h.bf16 %v793_v26  ;;  %v794_v28 = vunpack.i.l.bf16 %v793_v26  ;;  %v111_v29 = vpop.permute.xlu1 %110 }
  0x89   :  { %v118_v30 = vsel %vm116_vm7, %v111_v29, %v794_v28  ;;  %v119_v31 = vsel %vm116_vm7, %v794_v28, %v795_v27 }
  0x8a   :  { %v137_v32 = vpop.permute.xlu0 %136  ;;  %173 = vmatprep.subr.bf16.mxu0 %v118_v30  ;;  %770 = vmatpush3.bf16.msra.mxu1 %v119_v31 }
  0x8b   :  { %771 = vmatprep.subr.bf16.mxu1 %v831_v4  ;;  %v109_v33 = vpop.permute.xlu1 %108 }
  0x8c   :  { %v117_v34 = vsel %vm116_vm7, %v109_v33, %v111_v29 }
  0x8d   :  { %174 = vmatpush1.bf16.msra.mxu0 %v117_v34 }
  0x8e   :  { %v135_v35 = vpop.permute.xlu0 %134 }
  0x8f   :  { %v139_v36 = vpop.permute.xlu1 %138  ;;  %v143_v37 = vsel %vm142_vm8, %v135_v35, %v137_v32 }
  0x90   :  { %v144_v38 = vsel %vm142_vm8, %v137_v32, %v139_v36 }
  0x91   :  { %175 = vmatprep.subr.bf16.mxu0 %v144_v38 }
  0x92   :  { %176 = vmatpush1.bf16.msra.mxu0 %v143_v37 }
  0x93   :  { %v141_v40 = vpop.permute.xlu1 %140 }
  0x94   :  { %v145_v41 = vsel %vm142_vm8, %v139_v36, %v141_v40 }
  0x95   :  { %751 = vmatmul.mubr.msk.bf16.vlgmr.msra.gmra.mrb[0].mxu0 %vm165_vm9, %v152_v39  ;;  %772 = vmatpush3.bf16.msra.mxu1 %v145_v41 }
  0x96   :  { %443 = vmatprep.mubr.bf16.mxu0 %v830_v0 }
  0x98   :  { %774 = vmatmul.mubr.msk.bf16.vlgmr.msra.gmra.mrb[0].mxu1 %vm165_vm9, %v152_v39 }
  0x99   :  { %529 = vmatprep.mubr.bf16.mxu1 %v830_v0 }
 0x168   :  { %v203_v49 = vpop.f32.mrb[0].mxu0 }
 0x169   :  { %v250_v51 = vmax.f32 %v203_v49, 0.0  ;;  %v205_v52 = vpop.f32.mrb[1].mxu0 }
 0x16a   :  { %v251_v53 = vmax.f32 %v205_v52, 0.0  ;;  %v207_v54 = vpop.f32.mrb[2].mxu0 }
 0x16b   :  { %v270_v56 = vmul.f32 %v258_v48, %v250_v51  ;;  %v208_v57 = vpop.f32.mrb[3].mxu0  ;;  %v244_v58 = vpop.f32.mrb[0].mxu1 }
 0x16c   :  { %v271_v59 = vmul.f32 %v262_v50, %v251_v53  ;;  %v252_v60 = vmax.f32 %v244_v58, 0.0  ;;  %v775_v61 = vpop.f32.mrb[1].mxu1  ;;  %v379_v58 = vld [vmem:[%s1075_s2] sm:$0x3] }
 0x16d   :  { %v247_v62 = vpop.f32.mrb[2].mxu1 }
 0x16e   :  { %v272_v63 = vmul.f32 %v266_v55, %v252_v60  ;;  %v776_v1 = vpop.f32.mrb[3].mxu1  ;;  %v806_v2 = vpack.i.bf16 %v271_v59, %v270_v56 }
 0x170   :  { %807 = vrot.lane.b32.xlu0 %v806_v2, %s832_s30  ;;  %v796_v3 = vpack.i.bf16 %v831_v4, %v272_v63  ;;  %v754_v63 = vld [vmem:[%s1075_s2 + $0x2] sm:$0x3] }
 0x172   :  { %797 = vrot.lane.b32.xlu1 %v796_v3, %s832_s30 }
 0x174   :  { %812 = vrot.lane.b32.xlu0 %v806_v2, %s833_s0 }
 0x176   :  { %802 = vrot.lane.b32.xlu1 %v796_v3, %s833_s0 }
 0x178   :  { %817 = vrot.lane.b32.xlu0 %v806_v2, %s835_s10 }
 0x17a   :  { %822 = vrot.lane.b32.xlu1 %v796_v3, %s835_s10 }
 0x1e2   :  { %v808_v5 = vpop.permute.xlu0 %807 }
 0x1e3   :  { %v809_v7 = vunpack.i.l.bf16 %v808_v5  ;;  %v810_v20 = vunpack.i.h.bf16 %v808_v5 }
 0x1e4   :  { %v798_v6 = vpop.permute.xlu1 %797 }
 0x1e5   :  { %v800_v8 = vunpack.i.h.bf16 %v798_v6  ;;  %v799_v16 = vunpack.i.l.bf16 %v798_v6  ;;  %v300_v25 = vsel %vm90_vm6, %v809_v7, %v810_v20 }
 0x1e6   :  { %v813_v9 = vpop.permute.xlu0 %812  ;;  %v963_v29 = vpack.c.bf16 %v300_v25, %v270_v56 }
 0x1e7   :  { %v299_v10 = vsel %vm90_vm6, %v800_v8, %v809_v7  ;;  %v814_v17 = vunpack.i.l.bf16 %v813_v9  ;;  %v815_v30 = vunpack.i.h.bf16 %v813_v9 }
 0x1e8   :  { %v803_v11 = vpop.permute.xlu1 %802  ;;  %v373_v12 = vpack.c.bf16 %v299_v10, %v831_v4  ;;  %v301_v4 = vsel %vm90_vm6, %v810_v20, %v799_v16  ;;  %v756_v10 = vld [vmem:[%s1075_s2 + $0x4] sm:$0x3] }
 0x1e9   :  { %v805_v14 = vunpack.i.h.bf16 %v803_v11  ;;  %v958_v24 = vpack.c.bf16 %v301_v4, %v271_v59  ;;  %v804_v27 = vunpack.i.l.bf16 %v803_v11  ;;  %v326_v35 = vsel %vm116_vm7, %v814_v17, %v815_v30  ;;  %v758_v11 = vld [vmem:[%s1075_s2 + $0x6] sm:$0x3] }
 0x1ea   :  { %v818_v13 = vpop.permute.xlu0 %817  ;;  %473 = vrot.lane.b32.xlu1 %v373_v12, %s836_s1  ;;  %386 = vrot.lane.b32.xlu0 %v373_v12, %s837_s3 }
 0x1eb   :  { %v819_v18 = vunpack.i.l.bf16 %v818_v13  ;;  %v325_v21 = vsel %vm116_vm7, %v805_v14, %v814_v17  ;;  %v820_v28 = vunpack.i.h.bf16 %v818_v13  ;;  %v327_v32 = vsel %vm116_vm7, %v815_v30, %v804_v27 }
 0x1ec   :  { %v823_v15 = vpop.permute.xlu1 %822 }
 0x1ed   :  { %v825_v19 = vunpack.i.h.bf16 %v823_v15  ;;  %v824_v26 = vunpack.i.l.bf16 %v823_v15  ;;  %v352_v34 = vsel %vm142_vm8, %v819_v18, %v820_v28 }
 0x1ee   :  { %v976_v36 = vpack.c.bf16 %v352_v34, %v326_v35 }
 0x1ef   :  { %v351_v22 = vsel %vm142_vm8, %v825_v19, %v819_v18  ;;  %v353_v31 = vsel %vm142_vm8, %v820_v28, %v824_v26 }
 0x1f0   :  { %v376_v23 = vpack.c.bf16 %v351_v22, %v325_v21  ;;  %v378_v33 = vpack.c.bf16 %v353_v31, %v327_v32 }
 0x1f2   :  { %479 = vrot.lane.b32.xlu1 %v376_v23, %s836_s1  ;;  %392 = vrot.lane.b32.xlu0 %v376_v23, %s837_s3 }
 0x1f6   :  { %390 = vrot.lane.b32.xlu1 %v958_v24, %s837_s3  ;;  %548 = vrot.lane.b32.xlu0 %v373_v12, %s838_s15 }
 0x1fa   :  { %475 = vrot.lane.b32.xlu1 %v963_v29, %s836_s1  ;;  %388 = vrot.lane.b32.xlu0 %v963_v29, %s837_s3 }
 0x1fe   :  { %396 = vrot.lane.b32.xlu1 %v378_v33, %s837_s3  ;;  %477 = vrot.lane.b32.xlu0 %v958_v24, %s836_s1 }
 0x202   :  { %481 = vrot.lane.b32.xlu1 %v976_v36, %s836_s1  ;;  %394 = vrot.lane.b32.xlu0 %v976_v36, %s837_s3 }
 0x206   :  { %552 = vrot.lane.b32.xlu1 %v958_v24, %s838_s15  ;;  %483 = vrot.lane.b32.xlu0 %v378_v33, %s836_s1 }
 0x20a   :  { %556 = vrot.lane.b32.xlu1 %v976_v36, %s838_s15  ;;  %550 = vrot.lane.b32.xlu0 %v963_v29, %s838_s15 }
 0x20e   :  { %554 = vrot.lane.b32.xlu1 %v376_v23, %s838_s15  ;;  %558 = vrot.lane.b32.xlu0 %v378_v33, %s838_s15 }
 0x25c   :  { %v474_v37 = vpop.permute.xlu1 %473  ;;  %v387_v38 = vpop.permute.xlu0 %386 }
 0x264   :  { %v480_v39 = vpop.permute.xlu1 %479  ;;  %v393_v40 = vpop.permute.xlu0 %392 }
 0x268   :  { %v391_v41 = vpop.permute.xlu1 %390  ;;  %v549_v42 = vpop.permute.xlu0 %548 }
 0x26c   :  { %v476_v45 = vpop.permute.xlu1 %475  ;;  %v389_v47 = vpop.permute.xlu0 %388 }
 0x26d   :  { %v399_v48 = vsel %vm398_vm10, %v387_v38, %v389_v47  ;;  %v400_v49 = vsel %vm398_vm10, %v389_v47, %v391_v41  ;;  %v486_v53 = vsel %vm485_vm11, %v474_v37, %v476_v45 }
 0x26e   :  { %411 = vmatprep.subr.bf16.mxu0 %v400_v49 }
 0x26f   :  { %412 = vmatpush1.bf16.msra.mxu0 %v399_v48 }
 0x270   :  { %v397_v50 = vpop.permute.xlu1 %396  ;;  %v478_v51 = vpop.permute.xlu0 %477 }
 0x271   :  { %v487_v52 = vsel %vm485_vm11, %v476_v45, %v478_v51 }
 0x272   :  { %497 = vmatprep.subr.bf16.mxu1 %v487_v52 }
 0x273   :  { %498 = vmatpush1.bf16.msra.mxu1 %v486_v53 }
 0x274   :  { %v482_v54 = vpop.permute.xlu1 %481  ;;  %v395_v55 = vpop.permute.xlu0 %394 }
 0x275   :  { %v401_v56 = vsel %vm398_vm10, %v393_v40, %v395_v55  ;;  %v402_v57 = vsel %vm398_vm10, %v395_v55, %v397_v50  ;;  %v488_v62 = vsel %vm485_vm11, %v480_v39, %v482_v54 }
 0x276   :  { %413 = vmatprep.subr.bf16.mxu0 %v402_v57 }
 0x277   :  { %414 = vmatpush1.bf16.msra.mxu0 %v401_v56 }
 0x278   :  { %v553_v59 = vpop.permute.xlu1 %552  ;;  %v484_v60 = vpop.permute.xlu0 %483 }
 0x279   :  { %v489_v61 = vsel %vm485_vm11, %v482_v54, %v484_v60 }
 0x27a   :  { %499 = vmatprep.subr.bf16.mxu1 %v489_v61  ;;  %753 = vmatmul.mubr.msk.bf16.vlgmr.msra.gmra.mrb[4].mxu0 %vm407_vm12, %v379_v58 }
 0x27b   :  { %500 = vmatpush1.bf16.msra.mxu1 %v488_v62  ;;  %604 = vmatprep.mubr.bf16.mxu0 %v830_v0 }
 0x27c   :  { %v557_v1 = vpop.permute.xlu1 %556  ;;  %626 = vmatprep.subr.bf16.mxu1 %v958_v24  ;;  %v551_v2 = vpop.permute.xlu0 %550 }
 0x27d   :  { %v561_v3 = vsel %vm560_vm13, %v549_v42, %v551_v2  ;;  %v562_v5 = vsel %vm560_vm13, %v551_v2, %v553_v59 }
 0x27e   :  { %755 = vmatmul.mubr.msk.bf16.vlgmr.msra.gmra.mrb[4].mxu1 %vm407_vm12, %v754_v63  ;;  %572 = vmatprep.subr.bf16.mxu0 %v562_v5 }
 0x27f   :  { %573 = vmatpush1.bf16.msra.mxu0 %v561_v3  ;;  %627 = vmatpush1.bf16.msra.mxu1 %v963_v29 }
 0x280   :  { %v555_v6 = vpop.permute.xlu1 %554  ;;  %628 = vmatprep.subr.bf16.mxu1 %v378_v33  ;;  %v559_v7 = vpop.permute.xlu0 %558  ;;  %658 = vmatprep.mubr.bf16.mxu1 %v830_v0  ;;  %v360_v0 = vld [vmem:[%s1076_s4] sm:$0x3] }
 0x281   :  { %v563_v8 = vsel %vm560_vm13, %v555_v6, %v557_v1  ;;  %v564_v9 = vsel %vm560_vm13, %v557_v1, %v559_v7  ;;  %v456_v12 = vrot.slane %v360_v0, %v257_v44  ;;  %v460_v13 = vrot.slane %v360_v0, %v261_v46 }
 0x282   :  { %574 = vmatprep.subr.bf16.mxu0 %v564_v9 }
 0x283   :  { %575 = vmatpush1.bf16.msra.mxu0 %v563_v8  ;;  %629 = vmatpush1.bf16.msra.mxu1 %v976_v36  ;;  %v690_v8 = vld [vmem:[%s1077_s5] sm:$0xf] }
 0x286   :  { %757 = vmatmul.mubr.msk.bf16.vlgmr.msra.gmra.mrb[8].mxu0 %vm407_vm12, %v756_v10  ;;  %759 = vmatmul.mubr.msk.bf16.vlgmr.msra.gmra.mrb[8].mxu1 %vm407_vm12, %v758_v11  ;;  %v694_v11 = vld [vmem:[%s1078_s6] sm:$0xf] }
 0x34d   :  { %v1026_v14 = vpop.f32.mrb[4].mxu0 }
 0x34e   :  { %v463_v15 = vmul.f32 %v456_v12, %v1026_v14  ;;  %v1029_v16 = vpop.f32.mrb[5].mxu0 }
 0x34f   :  { %v464_v17 = vmul.f32 %v460_v13, %v1029_v16  ;;  %v449_v18 = vpop.f32.mrb[6].mxu0 }
 0x350   :  { %v467_v19 = vmul.f32 %v463_v15, %v1026_v14  ;;  %v450_v20 = vpop.f32.mrb[7].mxu0 }
 0x351   :  { %v468_v21 = vmul.f32 %v464_v17, %v1029_v16  ;;  %v1034_v22 = vpop.f32.mrb[4].mxu1 }
 0x352   :  { %v538_v44 = vmul.f32 %v1034_v22, %v456_v12  ;;  %v1037_v43 = vpop.f32.mrb[5].mxu1 }
 0x353   :  { %v539_v46 = vmul.f32 %v1037_v43, %v460_v13  ;;  %v535_v23 = vpop.f32.mrb[6].mxu1 }
 0x354   :  { %v540_v4 = vadd.f32 %v538_v44, %v463_v15  ;;  %v542_v24 = vmul.f32 %v538_v44, %v1034_v22  ;;  %v536_v25 = vpop.f32.mrb[7].mxu1 }
 0x355   :  { %v541_v26 = vadd.f32 %v539_v46, %v464_v17  ;;  %v543_v27 = vmul.f32 %v539_v46, %v1037_v43 }
 0x356   :  { %v544_v28 = vadd.f32 %v542_v24, %v467_v19 }
 0x357   :  { %v545_v29 = vadd.f32 %v543_v27, %v468_v21 }
 0x359   :  { %v606_v30 = vpop.f32.mrb[8].mxu0  ;;  %v660_v31 = vpop.f32.mrb[8].mxu1 }
 0x35a   :  { %v613_v32 = vmul.f32 %v606_v30, %v456_v12  ;;  %v667_v33 = vmul.f32 %v660_v31, %v456_v12  ;;  %v608_v34 = vpop.f32.mrb[9].mxu0  ;;  %v662_v35 = vpop.f32.mrb[9].mxu1 }
 0x35b   :  { %v614_v36 = vmul.f32 %v608_v34, %v460_v13  ;;  %v668_v37 = vmul.f32 %v662_v35, %v460_v13  ;;  %v610_v38 = vpop.f32.mrb[10].mxu0  ;;  %v664_v39 = vpop.f32.mrb[10].mxu1 }
 0x35c   :  { %v615_v40 = vadd.f32 %v613_v32, %v540_v4  ;;  %v617_v41 = vmul.f32 %v613_v32, %v606_v30  ;;  %v671_v42 = vmul.f32 %v667_v33, %v660_v31  ;;  %v611_v45 = vpop.f32.mrb[11].mxu0  ;;  %v665_v47 = vpop.f32.mrb[11].mxu1 }
 0x35d   :  { %v616_v48 = vadd.f32 %v614_v36, %v541_v26  ;;  %v618_v49 = vmul.f32 %v614_v36, %v608_v34  ;;  %v672_v50 = vmul.f32 %v668_v37, %v662_v35 }
 0x35e   :  { %v619_v51 = vadd.f32 %v617_v41, %v544_v28  ;;  %v669_v52 = vadd.f32 %v667_v33, %v615_v40 }
 0x35f   :  { %v620_v53 = vadd.f32 %v618_v49, %v545_v29  ;;  %v670_v54 = vadd.f32 %v668_v37, %v616_v48 }
 0x360   :  { %v676_v55 = vsel %vm675_vm14, %v669_v52, 0.0  ;;  %v673_v56 = vadd.f32 %v671_v42, %v619_v51 }
 0x361   :  { %v677_v57 = vsel %vm675_vm14, %v670_v54, 0.0  ;;  %v674_v58 = vadd.f32 %v672_v50, %v620_v53 }
 0x362   :  { %v678_v59 = vadd.f32 %v677_v57, %v676_v55  ;;  %v682_v60 = vsel %vm675_vm14, %v673_v56, 0.0 }
 0x363   :  { %v683_v61 = vsel %vm675_vm14, %v674_v58, 0.0 }
 0x364   :  { %679 = vadd.xlane.f32.xlu0 %v678_v59  ;;  %v684_v62 = vadd.f32 %v683_v61, %v682_v60 }
 0x366   :  { %685 = vadd.xlane.f32.xlu1 %v684_v62 }
 0x3f1   :  { %v680_v63 = vpop.xlane.xlu0 %679 }
 0x3f2   :  { %v681_v1 = vmul.f32 0.001953125, %v680_v63 }
 0x3f3   :  { %v686_v2 = vpop.xlane.xlu1 %685 }
 0x3f4   :  { %v688_v3 = vmul.f32 %v681_v1, %v681_v1  ;;  %v687_v5 = vmul.f32 0.001953125, %v686_v2 }
 0x3f6   :  { %v689_v6 = vsub.f32 %v687_v5, %v688_v3 }
 0x3f8   :  { %v691_v7 = vadd.f32 1e-05, %v689_v6 }
 0x3fa   :  { %828 = vrsqrt.f32 %v691_v7 }
 0x404   :  { %v829_v9 = vpop.eup %828 }
 0x405   :  { %v693_v10 = vmul.f32 %v829_v9, %v690_v8 }
 0x407   :  { %699 = vperm.xlu0 %826, %v693_v10   ;;  %v695_v0 = vmul.f32 %v693_v10, %v681_v1 }
 0x409   :  { %v696_v12 = vsub.f32 %v694_v11, %v695_v0 }
 0x40b   :  { %706 = vperm.xlu1 %827, %v696_v12  }
 0x486   :  { %v700_v13 = vpop.permute.xlu0 %699 }
 0x487   :  { %v711_v15 = vmul.f32 %v700_v13, %v1034_v22  ;;  %v712_v17 = vmul.f32 %v700_v13, %v1037_v43  ;;  %v719_v18 = vmul.f32 %v700_v13, %v660_v31  ;;  %v720_v19 = vmul.f32 %v700_v13, %v662_v35 }
 0x488   :  { %v702_v21 = vmul.f32 %v700_v13, %v1026_v14  ;;  %v703_v44 = vmul.f32 %v700_v13, %v1029_v16  ;;  %v715_v4 = vmul.f32 %v700_v13, %v606_v30  ;;  %v716_v24 = vmul.f32 %v700_v13, %v608_v34 }
 0x48a   :  { %v707_v20 = vpop.permute.xlu1 %706 }
 0x48b   :  { %v713_v46 = vadd.f32 %v711_v15, %v707_v20  ;;  %v714_v23 = vadd.f32 %v712_v17, %v707_v20  ;;  %v721_v25 = vadd.f32 %v719_v18, %v707_v20  ;;  %v722_v26 = vadd.f32 %v720_v19, %v707_v20 }
 0x48c   :  { %v709_v27 = vadd.f32 %v707_v20, %v702_v21  ;;  %v710_v28 = vadd.f32 %v707_v20, %v703_v44  ;;  %v717_v22 = vadd.f32 %v715_v4, %v707_v20  ;;  %v718_v33 = vadd.f32 %v716_v24, %v707_v20 }
 0x48d   :  { %v725_v29 = vrot.slane %v713_v46, 4  ;;  %v726_v32 = vrot.slane %v714_v23, 4  ;;  %v731_v43 = vrot.slane %v721_v25, 4  ;;  %v732_v31 = vrot.slane %v722_v26, 4 }
 0x48f   :  { %v735_v35 = vsel %vm675_vm14, %v709_v27, %v725_v29  ;;  %v736_v14 = vsel %vm675_vm14, %v710_v28, %v726_v32  ;;  %v737_v16 = vsel %vm675_vm14, %v717_v22, %v731_v43  ;;  %v738_v36 = vsel %vm675_vm14, %v718_v33, %v732_v31 }
 0x490   :  { %739 = vst [vmem:[%s1079_s7] sm:$0xff] %v735_v35  ;;  %740 = vst [vmem:[%s1079_s7 + $0x8] sm:$0xff] %v736_v14 }
 0x491   :  { %741 = vst [vmem:[%s1079_s7 + $0x10] sm:$0xff] %v737_v16  ;;  %742 = vst [vmem:[%s1079_s7 + $0x18] sm:$0xff] %v738_v36 }

</bundles_post_ra>
